<compile_context>
chip_gen: v6e
topology: v6e:2x2x1
jax: 0.10.0
libtpu: 0.0.40
codegen_flags: <defaults>
</compile_context>

<pallas_src>
import functools

import jax
import jax.numpy as jnp
from jax.experimental import pallas as pl
from jax.experimental.pallas import tpu as pltpu


def _msa_kernel(x_ref, w_ref, b_ref, o_ref, *, n_heads, d_head, mxu_dtype):
    """One grid step: Bb batch elements, all heads.

    x_ref: (Bb, S, d)      activations, f32, lane-dense last dim d
    w_ref: (H, dh, 3*dh)   per-head [Wq*scale | Wk | Wv], pre-transposed (y = x @ w), mxu_dtype
    b_ref: (H, 1, 3*dh)    per-head [bq*scale | bk | bv], f32 (added after f32 accumulation)
    o_ref: (Bb, S, d)      output, same layout as x
    """
    H, dh = n_heads, d_head
    Bb, S, d = x_ref.shape
    G = Bb * H                                            # fused (batch_block, head) group axis

    x = x_ref[...]                                        # (Bb, S, d) f32
    # Split features into heads once; afterwards every matmul is a single-batch-dim
    # einsum over G (the pattern Mosaic handles natively), with no lane-offset slices.
    xg = x.reshape(Bb, S, H, dh).transpose(0, 2, 1, 3).reshape(G, S, dh)   # (G, S, dh)

    w = w_ref[...]                                        # (H, dh, 3dh), already mxu_dtype
    b = b_ref[...]                                        # (H, 1, 3dh), f32
    if Bb > 1:                                            # static; duplicates tiny weights only
        w = jnp.tile(w, (Bb, 1, 1))                       # (G, dh, 3dh)
        b = jnp.tile(b, (Bb, 1, 1))                       # (G, 1, 3dh)

    # Fused q/k/v projection for all heads: bf16 operands, f32 accumulation on the MXU.
    qkv = jnp.einsum("gsd,gde->gse", xg.astype(mxu_dtype), w,
                     preferred_element_type=jnp.float32)  # (G, S, 3dh) f32
    qkv = qkv + b                                         # bias in f32

    q = qkv[..., 0 * dh:1 * dh]                           # 1/sqrt(dh) already folded into Wq/bq
    k = qkv[..., 1 * dh:2 * dh]
    v = qkv[..., 2 * dh:3 * dh]

    # scores[g] = q[g] @ k[g]^T  (contract dh of both; no explicit transpose of k).
    scores = jnp.einsum("gqd,gkd->gqk",
                        q.astype(mxu_dtype), k.astype(mxu_dtype),
                        preferred_element_type=jnp.float32)   # (G, S, S) f32

    # Numerically stable softmax over the last axis (== nn.Softmax(dim=-1)); exact
    # divide so rows sum to 1 exactly (parity with the PyTorch module); all f32.
    m = jnp.max(scores, axis=-1, keepdims=True)
    p = jnp.exp(scores - m)
    attn = p / jnp.sum(p, axis=-1, keepdims=True)

    out = jnp.einsum("gqk,gkd->gqd",
                     attn.astype(mxu_dtype), v.astype(mxu_dtype),
                     preferred_element_type=jnp.float32)      # (G, S, dh) f32

    # torch.hstack of heads: (G, S, dh) -> (Bb, S, H*dh); one lane-dense full-width store.
    out = out.reshape(Bb, H, S, dh).transpose(0, 2, 1, 3).reshape(Bb, S, H * dh)
    o_ref[...] = out.astype(o_ref.dtype)


def _pack_qkv(wq, wk, wv, bq, bk, bv, d_head):
    """Pack per-head weights into (H, dh, 3*dh) and biases into (H, 1, 3*dh), folding
    the 1/sqrt(d_head) attention scale into the q projection (weights and bias)."""
    scale = 1.0 / (float(d_head) ** 0.5)
    w_packed = jnp.concatenate([wq * scale, wk, wv], axis=-1)       # (H, dh, 3dh)
    b_packed = jnp.concatenate([bq * scale, bk, bv], axis=-1)       # (H, 3dh)
    return w_packed, b_packed[:, None, :]                           # (H, 1, 3dh)


def _choose_batch_block(batch, seq, dim, itemsize, target_bytes=1 << 20, min_steps=4):
    """Largest batch block up to ~target_bytes per step while keeping >= min_steps grid
    steps when the batch allows it (>= 2 steps keeps both v7x TensorCores busy)."""
    per_elem = max(seq * dim * itemsize, 1)
    bb = int(max(1, min(batch, target_bytes // per_elem)))
    while bb > 1 and (batch // bb) < min_steps:
        bb -= 1
    while batch % bb:
        bb -= 1
    return max(bb, 1)


def my_msa_pallas(x, wq, wk, wv, bq, bk, bv, n_heads, mxu_dtype=jnp.bfloat16):
    """x: (B, S, d) f32.  w*: (H, dh, dh) stored transposed (y = x @ w + b).  b*: (H, dh)."""
    B, S, d = x.shape
    H = n_heads
    dh = d // H
    assert d == H * dh

    w_packed, b_packed = _pack_qkv(wq, wk, wv, bq, bk, bv, dh)
    w_packed = w_packed.astype(mxu_dtype)       # bf16 weights: native MXU dtype, half the DMA bytes
    b_packed = b_packed.astype(jnp.float32)     # bias added after f32 accumulation

    Bb = _choose_batch_block(B, S, d, x.dtype.itemsize)
    grid = (B // Bb,)

    kernel = functools.partial(_msa_kernel, n_heads=H, d_head=dh, mxu_dtype=mxu_dtype)

    return pl.pallas_call(
        kernel,
        out_shape=jax.ShapeDtypeStruct((B, S, d), x.dtype),
        grid_spec=pltpu.PrefetchScalarGridSpec(
            num_scalar_prefetch=0,
            grid=grid,
            in_specs=[
                pl.BlockSpec((Bb, S, d), lambda i: (i, 0, 0)),        # activations (lane-dense)
                pl.BlockSpec((H, dh, 3 * dh), lambda i: (0, 0, 0)),   # packed weights (constant block)
                pl.BlockSpec((H, 1, 3 * dh), lambda i: (0, 0, 0)),    # packed bias (constant block)
            ],
            out_specs=pl.BlockSpec((Bb, S, d), lambda i: (i, 0, 0)),
        ),
        compiler_params=pltpu.CompilerParams(
            dimension_semantics=("parallel",),
            # 2x double-buffered (Bb,S,d) in+out blocks plus the tiny weights fit with
            # ample headroom; 32 MiB == v6e/v7x scoped default and raises v5e's 16 MiB.
            vmem_limit_bytes=32 * 1024 * 1024,
        ),
    )(x, w_packed, b_packed)


def my_msa_reference(x, wq, wk, wv, bq, bk, bv, n_heads):
    """Pure-JAX f32 reference matching the PyTorch forward exactly."""
    B, S, d = x.shape
    H = n_heads
    dh = d // H
    hp = jax.lax.Precision.HIGHEST
    xh = x.reshape(B, S, H, dh).transpose(0, 2, 1, 3)                                # (B,H,S,dh)
    q = jnp.einsum("bhsd,hde->bhse", xh, wq, precision=hp) + bq[None, :, None, :]
    k = jnp.einsum("bhsd,hde->bhse", xh, wk, precision=hp) + bk[None, :, None, :]
    v = jnp.einsum("bhsd,hde->bhse", xh, wv, precision=hp) + bv[None, :, None, :]
    scores = jnp.einsum("bhqd,bhkd->bhqk", q, k, precision=hp) / (dh ** 0.5)
    attn = jax.nn.softmax(scores, axis=-1)
    out = jnp.einsum("bhqk,bhkd->bhqd", attn, v, precision=hp)
    return out.transpose(0, 2, 1, 3).reshape(B, S, d)                                # torch.hstack of heads


if __name__ == "__main__":
    # Small shapes consistent with the module: batch=2, seq=8, d=32, n_heads=2 -> d_head=16
    B, S, d, H = 2, 8, 32, 2
    dh = d // H

    key = jax.random.PRNGKey(0)
    kx, kwq, kwk, kwv, kbq, kbk, kbv = jax.random.split(key, 7)

    x = jax.random.normal(kx, (B, S, d), dtype=jnp.float32)

    # Per-head nn.Linear(d_head, d_head) params; weights stored transposed so y = x @ w + b.
    scale = 1.0 / (dh ** 0.5)
    wq = scale * jax.random.normal(kwq, (H, dh, dh), dtype=jnp.float32)
    wk = scale * jax.random.normal(kwk, (H, dh, dh), dtype=jnp.float32)
    wv = scale * jax.random.normal(kwv, (H, dh, dh), dtype=jnp.float32)
    bq = scale * jax.random.normal(kbq, (H, dh), dtype=jnp.float32)
    bk = scale * jax.random.normal(kbk, (H, dh), dtype=jnp.float32)
    bv = scale * jax.random.normal(kbv, (H, dh), dtype=jnp.float32)

    ref = my_msa_reference(x, wq, wk, wv, bq, bk, bv, n_heads=H)

    # 1) f32 MXU path: strict semantic-parity check against the pure-JAX reference.
    out_f32 = jax.block_until_ready(
        my_msa_pallas(x, wq, wk, wv, bq, bk, bv, n_heads=H, mxu_dtype=jnp.float32))
    assert out_f32.shape == (B, S, d)
    assert jnp.allclose(out_f32, ref, atol=1e-3, rtol=1e-3), "f32 Pallas output mismatch vs reference"

    # 2) Default bf16-operand path (native MXU dtype on v5e/v6e/v7x, f32 accumulation).
    #    Wider tolerance reflects only bf16 operand rounding; semantics are identical.
    out_bf16 = jax.block_until_ready(
        my_msa_pallas(x, wq, wk, wv, bq, bk, bv, n_heads=H))
    assert out_bf16.shape == (B, S, d)
    assert jnp.allclose(out_bf16, ref, atol=1e-1, rtol=1e-1), "bf16 Pallas output mismatch vs reference"

    print("KERNEL_OK")
</pallas_src>

<mosaic_0001>
module attributes {stable_mosaic.version = 11 : i64} {
  func.func @_msa_kernel(%arg0: i32, %arg1: memref<1x8x32xf32, #tpu.memory_space<vmem>>, %arg2: memref<2x16x48xf32, #tpu.memory_space<vmem>>, %arg3: memref<2x1x48xf32, #tpu.memory_space<vmem>>, %arg4: memref<1x8x32xf32, #tpu.memory_space<vmem>>) attributes {dimension_semantics = [#tpu.dimension_semantics<parallel>], iteration_bounds = array<i64: 2>, scalar_prefetch = 0 : i64, scratch_operands = 0 : i64, tpu.core_type = #tpu.core_type<tc>, window_params = [{transform_indices = @transform_0, window_bounds = array<i64: 1, 8, 32>}, {pipeline_mode = #tpu.pipeline_mode<synchronous>, transform_indices = @transform_1, window_bounds = array<i64: 2, 16, 48>}, {pipeline_mode = #tpu.pipeline_mode<synchronous>, transform_indices = @transform_2, window_bounds = array<i64: 2, 1, 48>}, {transform_indices = @transform_3, window_bounds = array<i64: 1, 8, 32>}]} {
    %c0 = arith.constant 0 : index
    %c0_0 = arith.constant 0 : index
    %c0_1 = arith.constant 0 : index
    %0 = vector.load %arg1[%c0, %c0_0, %c0_1] : memref<1x8x32xf32, #tpu.memory_space<vmem>>, vector<1x8x32xf32>
    %1 = vector.shape_cast %0 : vector<1x8x32xf32> to vector<1x8x2x16xf32>
    %2 = tpu.transpose %1, [0, 2, 1, 3] : vector<1x8x2x16xf32> -> vector<1x2x8x16xf32>
    %3 = vector.shape_cast %2 : vector<1x2x8x16xf32> to vector<2x8x16xf32>
    %c0_2 = arith.constant 0 : index
    %c0_3 = arith.constant 0 : index
    %c0_4 = arith.constant 0 : index
    %4 = vector.load %arg2[%c0_2, %c0_3, %c0_4] : memref<2x16x48xf32, #tpu.memory_space<vmem>>, vector<2x16x48xf32>
    %c0_5 = arith.constant 0 : index
    %c0_6 = arith.constant 0 : index
    %c0_7 = arith.constant 0 : index
    %5 = vector.load %arg3[%c0_5, %c0_6, %c0_7] : memref<2x1x48xf32, #tpu.memory_space<vmem>>, vector<2x1x48xf32>
    "tpu.trace_start"() <{level = 10 : i32, message = "gsd,gde->gse"}> : () -> ()
    %cst = arith.constant dense<0.000000e+00> : vector<2x8x48xf32>
    %6 = tpu.matmul %3, %4, %cst {dimension_numbers = #tpu.dot_dimension_numbers<[2], [1], [1], [2], [0, 0, 0, 1, 1, 2], [0], [0]>} : vector<2x8x16xf32>, vector<2x16x48xf32>, vector<2x8x48xf32> -> vector<2x8x48xf32>
    "tpu.trace_stop"() : () -> ()
    %7 = vector.broadcast %5 : vector<2x1x48xf32> to vector<2x8x48xf32>
    %8 = arith.addf %6, %7 : vector<2x8x48xf32>
    %9 = vector.extract_strided_slice %8 {offsets = [0, 0, 0], sizes = [2, 8, 16], strides = [1, 1, 1]} : vector<2x8x48xf32> to vector<2x8x16xf32>
    %10 = vector.extract_strided_slice %8 {offsets = [0, 0, 16], sizes = [2, 8, 16], strides = [1, 1, 1]} : vector<2x8x48xf32> to vector<2x8x16xf32>
    %11 = vector.extract_strided_slice %8 {offsets = [0, 0, 32], sizes = [2, 8, 16], strides = [1, 1, 1]} : vector<2x8x48xf32> to vector<2x8x16xf32>
    "tpu.trace_start"() <{level = 10 : i32, message = "gqd,gkd->gqk"}> : () -> ()
    %cst_8 = arith.constant dense<0.000000e+00> : vector<2x8x8xf32>
    %12 = tpu.matmul %9, %10, %cst_8 {dimension_numbers = #tpu.dot_dimension_numbers<[2], [2], [1], [1], [0, 0, 0, 1, 1, 1], [0], [0]>} : vector<2x8x16xf32>, vector<2x8x16xf32>, vector<2x8x8xf32> -> vector<2x8x8xf32>
    "tpu.trace_stop"() : () -> ()
    %cst_9 = arith.constant dense<0xFF800000> : vector<2x8xf32>
    %13 = vector.multi_reduction <maximumf>, %12, %cst_9 [2] : vector<2x8x8xf32> to vector<2x8xf32>
    %14 = vector.shape_cast %13 : vector<2x8xf32> to vector<2x8x1xf32>
    %15 = vector.broadcast %14 : vector<2x8x1xf32> to vector<2x8x8xf32>
    %16 = arith.subf %12, %15 : vector<2x8x8xf32>
    %17 = math.exp %16 : vector<2x8x8xf32>
    %cst_10 = arith.constant dense<0.000000e+00> : vector<2x8xf32>
    %18 = vector.multi_reduction <add>, %17, %cst_10 [2] : vector<2x8x8xf32> to vector<2x8xf32>
    %19 = vector.shape_cast %18 : vector<2x8xf32> to vector<2x8x1xf32>
    %20 = vector.broadcast %19 : vector<2x8x1xf32> to vector<2x8x8xf32>
    %21 = arith.divf %17, %20 : vector<2x8x8xf32>
    "tpu.trace_start"() <{level = 10 : i32, message = "gqk,gkd->gqd"}> : () -> ()
    %cst_11 = arith.constant dense<0.000000e+00> : vector<2x8x16xf32>
    %22 = tpu.matmul %21, %11, %cst_11 {dimension_numbers = #tpu.dot_dimension_numbers<[2], [1], [1], [2], [0, 0, 0, 1, 1, 2], [0], [0]>} : vector<2x8x8xf32>, vector<2x8x16xf32>, vector<2x8x16xf32> -> vector<2x8x16xf32>
    "tpu.trace_stop"() : () -> ()
    %23 = vector.shape_cast %22 : vector<2x8x16xf32> to vector<1x2x8x16xf32>
    %24 = tpu.transpose %23, [0, 2, 1, 3] : vector<1x2x8x16xf32> -> vector<1x8x2x16xf32>
    %25 = vector.shape_cast %24 : vector<1x8x2x16xf32> to vector<1x8x32xf32>
    %c0_12 = arith.constant 0 : index
    %c0_13 = arith.constant 0 : index
    %c0_14 = arith.constant 0 : index
    %26 = vector.load %arg4[%c0_12, %c0_13, %c0_14] : memref<1x8x32xf32, #tpu.memory_space<vmem>>, vector<1x8x32xf32>
    tpu.vector_store %arg4[%c0_12, %c0_13, %c0_14], %25 {strides = array<i32>} : memref<1x8x32xf32, #tpu.memory_space<vmem>>, vector<1x8x32xf32>,
    return
  }
  func.func @transform_0(%arg0: i32) -> (i32, i32, i32) {
    %c0_i32 = arith.constant 0 : i32
    %c0_i32_0 = arith.constant 0 : i32
    %c0_i32_1 = arith.constant 0 : i32
    return %arg0, %c0_i32, %c0_i32_0 : i32, i32, i32
  }
  func.func @transform_1(%arg0: i32) -> (i32, i32, i32) {
    %c0_i32 = arith.constant 0 : i32
    %c0_i32_0 = arith.constant 0 : i32
    %c0_i32_1 = arith.constant 0 : i32
    %c0_i32_2 = arith.constant 0 : i32
    return %c0_i32, %c0_i32_0, %c0_i32_1 : i32, i32, i32
  }
  func.func @transform_2(%arg0: i32) -> (i32, i32, i32) {
    %c0_i32 = arith.constant 0 : i32
    %c0_i32_0 = arith.constant 0 : i32
    %c0_i32_1 = arith.constant 0 : i32
    %c0_i32_2 = arith.constant 0 : i32
    return %c0_i32, %c0_i32_0, %c0_i32_1 : i32, i32, i32
  }
  func.func @transform_3(%arg0: i32) -> (i32, i32, i32) {
    %c0_i32 = arith.constant 0 : i32
    %c0_i32_0 = arith.constant 0 : i32
    %c0_i32_1 = arith.constant 0 : i32
    return %arg0, %c0_i32, %c0_i32_0 : i32, i32, i32
  }
}

</mosaic_0001>

<bundles_post_ra>
// kernel: tpu_custom_call.1
= control target key start
LH: loop header
LB: loop body
LE: loop exit
PB: predicated region body
PF: predicated region fallthrough
CT: control target
= control target key end

     0   :  { %8 = vsyncpa [#allocation3], 0  ;;  %s1581_s0 = inlined_call_operand.hbm [shape: f32[2,8,32], index: 0, kind: input, shape index: {}]   ;;  %s1582_s1 = inlined_call_operand.hbm [shape: f32[2,16,48], index: 1, kind: input, shape index: {}]   ;;  %s1583_s2 = inlined_call_operand.vmem [shape: f32[2,1,48], index: 2, kind: input, shape index: {}]   ;;  %s1584_s3 = inlined_call_operand.hbm [shape: f32[2,8,32], index: 3, kind: output, shape index: {}]  }
   0x1   :  { %10 = vsyncpa [#allocation3 + $0x1], 0 }
   0x2   :  { %11 = vsyncpa [#allocation6], 0 }
   0x3   :  { %12 = vsyncpa [#allocation4], 0 }
   0x4   :  { %14 = vsyncpa [#allocation4 + $0x1], 0  ;;  %s1339_s12 = smov 0   ;;  %s1341_s13 = smov 0  }
   0x5   :  { %s1343_s14 = smov 0   ;;  %s1345_s15 = smov 0  }
   0x6 LB: > { %s1360_s16 = sadd.s32 4294967295, %s1305_s15   ;;  %s1033_s17 = sadd.s32 4294967294, %s1305_s15   ;;  %s1305_s15 = sphi %s1345_s15, %s1606_s15   ;;  %s1301_s14 = sphi %s1343_s14, %s1605_s14   ;;  %s1297_s13 = sphi %s1341_s13, %s1604_s13   ;;  %s1293_s12 = sphi %s1339_s12, %s1603_s12  }
   0x7   : > { %p40_p0 = scmp.ne.s32.totalorder %s1297_s13, %s1293_s12  ;;  %p1585_p1 = scmp.eq.s32.totalorder %s1360_s16, 0 }
   0x8   : > { %p112_p3 = scmp.eq.s32.totalorder %s1033_s17, 1  ;;  %p1034_p5 = scmp.ge.s32.totalorder %s1305_s15, 1 }
   0x9   : > { %p1369_p4 = por %p1585_p1, %p40_p0  ;;  %p119_p7 = scmp.lt.s32.totalorder %s1305_s15, 3 }
   0xa   : > { %p1374_p6 = por %p112_p3, %p40_p0  ;;  %s1307_s21 = smov [#allocation5]  }
   0xb   : > { %s1589_s18 = scalar_select %p1369_p4, 1, 0 }
   0xc   : > { %s1590_s19 = scalar_select %p1374_p6, 1, 0 }
   0xd   : > { %p1379_p8 = pnand %p1034_p5, %p119_p7  ;;  %s131_s22 = sshll.u32 %s1307_s21, 4  ;;  %s132_s22 = int_to_ptr.vmem [resolvable:$true] %s131_s22 }
   0xe   : > { %s1393_s24 = sadd.s32 1, %s1305_s15   ;;  %s27_s25 = sadd.s32 1, %s1301_s14 }
   0xf   : > { %s1591_s20 = scalar_select %p1379_p8, 1, 0 }
  0x10   : > { %p1117_p9 = pneg %p1379_p8  ;;  %s24_s26 = ssub.s32 %s1305_s15, %s1393_s24 }
  0x11   : > { %s1194_s27 = scalar_lea.vmem %s132_s22, 512  ;;  %p1202_p5 = scmp.lt.s32.totalorder %s132_s22, %s132_s22 }
  0x12   : > { %p1388_p11 = pnand %p1117_p9, %p1585_p1  ;;  %p1195_p13 = scmp.ne.s32.totalorder %s132_s22, %s1194_s27 }
  0x13   : > { %p1203_p7 = scmp.lt.s32.totalorder %s1194_s27, %s1194_s27 }
  0x14   : > { %p1185_p12 = pneg %p1388_p11 }
  0x15   : > { %p1204_p10 = por %p1203_p7, %p1202_p5 }
  0x16   : > { %p1197_p0 = pnand %p1195_p13, %p1185_p12 }
  0x18   : > { %p1198_p3 = pneg %p1197_p0 }
  0x1a   : > { %p1205_p2 = pnand %p1204_p10, %p1198_p3 }
  0x1c   : > { %1208 = shalt.err (!%p1205_p2)
}
  0x1d   : > { %s1308_s28 = smov 128   ;;  %s1309_s29 = smov 8  }
  0x1e   : > { %1120 = dma.hbm_to_vmem [thread:$0]  (!%p1388_p11), %s1582_s1, 512, %s132_s22, [#allocation6], %s1308_s28, %s1308_s28, %s1309_s29  }
  0x1f   : > { %p25_p9 = scmp.eq.s32.totalorder %s24_s26, 0  ;;  %p34_p12 = scmp.ne.s32.totalorder %s1301_s14, %s1297_s13 }
  0x20   : > { %p35_p10 = scmp.eq.s32.totalorder %s1305_s15, 0  ;;  %p1130_p2 = scmp.lt.s32.totalorder %s1305_s15, 2 }
  0x21   : > { %s1410_s5 = scalar_select %p25_p9, %s1301_s14, %s27_s25  }
  0x22   : > { %p36_p13 = por %p35_p10, %p34_p12  ;;  %p1593_p0 = scmp.eq.s32.totalorder %s1360_s16, 1 }
  0x23   : > { %s148_s7 = sand.u32 1, %s1301_s14   ;;  %s1038_s8 = sshll.u32 %s1305_s15, 7 }
  0x24   : > { %p1414_p3 = por %p1593_p0, %p34_p12  ;;  %s1037_s9 = sshll.u32 %s148_s7, 3 }
  0x25   : > { %s1423_s17 = scalar_lea.hbm %s1581_s0, %s1038_s8  ;;  %s152_s21 = scalar_lea.vmem [#allocation2], %s1037_s9 }
  0x26   : > { %s1594_s6 = scalar_select %p1414_p3, 1, 0 }
  0x27   : > { %s159_s22 = sshll.u32 %s152_s21, 4  ;;  %p1425_p11 = pnand %p1130_p2, %p36_p13  ;;  %s160_s22 = int_to_ptr.vmem [resolvable:$true] %s159_s22 }
  0x28   : > { %s149_s25 = scalar_lea.sflag [#allocation3], %s148_s7  ;;  %s1209_s26 = scalar_lea.hbm %s1423_s17, 128 }
  0x29   : > { %p1210_p5 = scmp.ne.s32.totalorder %s1423_s17, %s1209_s26  ;;  %p1211_p7 = pneg %p1425_p11 }
  0x2a   : > { %s1214_s29 = scalar_lea.hbm %s1581_s0, 256  ;;  %p1215_p10 = scmp.lt.s32.totalorder %s1423_s17, %s1581_s0 }
  0x2b   : > { %p1212_p9 = pnand %p1211_p7, %p1210_p5  ;;  %p1216_p2 = scmp.lt.s32.totalorder %s1214_s29, %s1209_s26 }
  0x2d   : > { %p1213_p12 = pneg %p1212_p9  ;;  %p1217_p13 = por %p1216_p2, %p1215_p10 }
  0x2f   : > { %p1218_p0 = pnand %p1217_p13, %p1213_p12 }
  0x31   : > { %1221 = shalt.err (!%p1218_p0)
}
  0x32   : > { %s1222_s8 = scalar_lea.vmem %s160_s22, 128  ;;  %s1310_s7 = smov [#allocation2]  }
  0x33   : > { %p1223_p1 = scmp.ne.s32.totalorder %s160_s22, %s1222_s8  ;;  %s1227_s9 = sshll.u32 %s1310_s7, 4  ;;  %s1228_s9 = int_to_ptr.vmem [resolvable:$false] %s1227_s9 }
  0x34   : > { %s1229_s10 = scalar_lea.vmem %s1228_s9, 256  ;;  %p1230_p5 = scmp.lt.s32.totalorder %s160_s22, %s1228_s9 }
  0x35   : > { %p1225_p6 = pnand %p1223_p1, %p1211_p7  ;;  %p1231_p9 = scmp.lt.s32.totalorder %s1229_s10, %s1222_s8 }
  0x37   : > { %p1226_p3 = pneg %p1225_p6  ;;  %p1232_p4 = por %p1231_p9, %p1230_p5 }
  0x39   : > { %p1233_p8 = pnand %p1232_p4, %p1226_p3 }
  0x3b   : > { %1236 = shalt.err (!%p1233_p8)
}
  0x3c   : > { %1124 = dma.hbm_to_vmem [thread:$0]  (!%p1425_p11), %s1423_s17, 128, %s160_s22, %s149_s25  }
  0x3d   : > { %p1596_p12 = scmp.ne.s32.totalorder %s1591_s20, 0 }
  0x3e   : > { %s1446_s11 = sand.u32 (!%p1596_p12), 1, %s1297_s13   ;;  %p1597_p1 = scmp.ne.s32.totalorder (!%p1596_p12), %s1589_s18, 0 }
  0x3f   : > { %168 = sbr.rel (%p1596_p12) target bundleno = 1367 (0x557), region = 32  ;;  %s1040_s21 = sshll.u32 (!%p1596_p12), %s1446_s11, 3 }
  0x40   : > { %s171_s26 = scalar_lea.sflag (!%p1596_p12), [#allocation3], %s1446_s11  ;;  %s174_s27 = scalar_lea.vmem (!%p1596_p12), [#allocation2], %s1040_s21 }
  0x44   : > { %1280 = dma.done.wait (%p1597_p1), %s171_s26, 128  }
  0x45   : > { %1282 = vsyncadd (%p1597_p1), %s171_s26, 4294967168  ;;  %p1598_p4 = scmp.eq.s32.totalorder %s1360_s16, 0 }
  0x47   : > { %1284 = dma.done.wait (%p1598_p4), [#allocation6], 512   ;;  %p1599_p6 = pmov %p1598_p4 }
  0x48   : > { %v1311_v0 = vmov 0.0   ;;  %vm1312_vm0 = vmmov 0   ;;  %v201_v1 = vld [vmem:[%s174_s27] sm:$0xff]  ;;  %v323_v2 = vld [vmem:[#allocation5 + $0x8] sm:$0xff]  ;;  %s1313_s18 = smov 112   ;;  %v322_v4 = vld [vmem:[#allocation5] sm:$0xff]  ;;  %v210_v8 = vlaneseq }
  0x49   : > { %1286 = vsyncadd (%p1599_p6), [#allocation6], 4294966784  ;;  %1075 = vmatprep.subr.mxu0 %v1311_v0  ;;  %1082 = vmatprep.subr.mxu1 %v1311_v0  ;;  %v325_v3 = vld [vmem:[#allocation5 + $0x18] sm:$0xff]  ;;  %v324_v5 = vld [vmem:[#allocation5 + $0x10] sm:$0xff]  ;;  %v1314_v6 = vmov 1983009808   ;;  %v206_v14 = vcombine.high %v201_v1, %v1311_v0 }
  0x4a   : > { %1079 = vmatprep.mubr.msk.f32.mxu0 %vm1312_vm0, %v1311_v0  ;;  %1086 = vmatprep.mubr.msk.f32.mxu1 %vm1312_vm0, %v1311_v0  ;;  %v208_v7 = vunpack.c.l.s4 %v1314_v6  ;;  %v211_v10 = vshrl.u32 %v210_v8, 7  ;;  %v1315_v11 = vmov 1934713408   ;;  %vm340_vm1 = vcmask 130048   ;;  %v1045_v45 = vld [vmem:[%s1583_s2] ss:$0 sm:$0xff] }
  0x4b   : > { %203 = vrot.lane.b32.xlu0 %v201_v1, %s1313_s18  ;;  %1076 = vmatpush3.msra.mxu0 %v323_v2  ;;  %v239_v12 = vunpack.c.l.s4 %v1315_v11  ;;  %v1046_v46 = vld [vmem:[%s1583_s2 + $0x1] ss:$0 sm:$0xff]  ;;  %vm641_vm2 = vcmask 64512   ;;  %s1316_s25 = smov 96   ;;  %s1317_s28 = smov 16   ;;  %vm937_vm3 = vcmask 261120  }
  0x4c   : > { %1083 = vmatpush3.msra.mxu1 %v325_v3  ;;  %1077 = vmatprep.subr.mxu0 %v1311_v0  ;;  %v209_v9 = vunpack.c.0.s8 %v208_v7  ;;  %s1058_s29 = sshll.u32 %s1360_s16, 7  ;;  %s200_s30 = scalar_lea.vmem [#allocation7], %s1040_s21 }
  0x4d   : > { %1084 = vmatprep.subr.mxu1 %v1311_v0  ;;  %1078 = vmatpush3.msra.mxu0 %v322_v4  ;;  %v240_v15 = vunpack.c.0.s8 %v239_v12  ;;  %s953_s4 = sshll.u32 %s200_s30, 4  ;;  %s1543_s9 = scalar_lea.hbm %s1584_s3, %s1058_s29  ;;  %s954_s4 = int_to_ptr.vmem [resolvable:$true] %s953_s4 }
  0x4e   : > { %1085 = vmatpush3.msra.mxu1 %v324_v5  ;;  %1089 = vmatprep.subr.mxu0 %v1311_v0  ;;  %v1471_v13 = vsub.s32 %v209_v9, %v211_v10  ;;  %s940_s10 = scalar_lea.sflag [#allocation4], %s1446_s11  ;;  %s1237_s26 = scalar_lea.vmem %s954_s4, 128 }
  0x4f   : > { %1094 = vmatprep.subr.mxu1 %v1311_v0  ;;  %v1476_v19 = vsub.s32 %v240_v15, %v211_v10  ;;  %p1238_p8 = scmp.ne.s32.totalorder %s954_s4, %s1237_s26  ;;  %p1600_p3 = scmp.ne.s32.totalorder %s1594_s6, 0 }
  0x50   : > { %v213_v16 = vrot.slane %v201_v1, %v1471_v13  ;;  %v220_v18 = vrot.slane %v206_v14, %v1471_v13  ;;  %s1318_s16 = smov [#allocation7]  }
  0x51   : > { %p1239_p11 = pnand %p1238_p8, %p1600_p3  ;;  %s1241_s21 = sshll.u32 %s1318_s16, 4  ;;  %s1242_s21 = int_to_ptr.vmem [resolvable:$false] %s1241_s21 }
  0x52   : > { %s1243_s27 = scalar_lea.vmem %s1242_s21, 256  ;;  %p1244_p10 = scmp.lt.s32.totalorder %s954_s4, %s1242_s21 }
  0x53   : > { %p1240_p7 = pneg %p1239_p11  ;;  %p1245_p2 = scmp.lt.s32.totalorder %s1243_s27, %s1237_s26 }
  0x55   : > { %p1246_p13 = por %p1245_p2, %p1244_p10 }
  0x57   : > { %p1247_p0 = pnand %p1246_p13, %p1240_p7 }
  0xbd   : > { %v204_v17 = vpop.permute.xlu0 %203 }
  0xbe   : > { %v221_v20 = vcombine.high %v204_v17, %v1311_v0  ;;  %v228_v21 = vrot.slane %v204_v17, %v1471_v13 }
  0xc0   : > { %v235_v22 = vrot.slane %v221_v20, %v1471_v13  ;;  %v236_v23 = vcombine.low %v213_v16, %v228_v21  ;;  %v237_v24 = vcombine.high %v213_v16, %v228_v21 }
  0xc2   : > { %v244_v25 = vrot.slane %v236_v23, %v1476_v19  ;;  %v251_v26 = vrot.slane %v237_v24, %v1476_v19  ;;  %v252_v27 = vcombine.low %v220_v18, %v235_v22  ;;  %v253_v28 = vcombine.high %v220_v18, %v235_v22 }
  0xc4   : > { %v260_v29 = vrot.slane %v252_v27, %v1476_v19  ;;  %v267_v30 = vrot.slane %v253_v28, %v1476_v19  ;;  %v272_v31 = vcombine.low %v244_v25, %v251_v26  ;;  %v1043_v32 = vcombine.high %v244_v25, %v251_v26 }
  0xc6   : > { %v279_v33 = vrot.slane %v272_v31, %v1471_v13  ;;  %v287_v34 = vrot.slane %v1043_v32, %v1471_v13  ;;  %v288_v35 = vcombine.low %v260_v29, %v267_v30  ;;  %v1044_v36 = vcombine.high %v260_v29, %v267_v30 }
  0xc8   : > { %v295_v37 = vrot.slane %v288_v35, %v1471_v13  ;;  %v303_v38 = vrot.slane %v1044_v36, %v1471_v13  ;;  %v304_v39 = vcombine.low %v279_v33, %v287_v34 }
  0xca   : > { %v312_v40 = vcombine.low %v295_v37, %v303_v38  ;;  %v311_v41 = vrot.slane %v304_v39, %v1476_v19 }
  0xcc   : > { %v319_v42 = vrot.slane %v312_v40, %v1476_v19 }
  0xce   : > { %v320_v43 = vcombine.low %v311_v41, %v319_v42  ;;  %v321_v44 = vcombine.high %v311_v41, %v319_v42 }
  0xd0   : > { %1080 = vmatmul.mubr.msk.f32.vlgmr.msra.gmra.mxu0 %vm340_vm1, %v320_v43  ;;  %1087 = vmatmul.mubr.msk.f32.vlgmr.msra.gmra.mxu1 %vm340_vm1, %v321_v44 }
  0xd1   : > { %1091 = vmatprep.mubr.msk.f32.mxu0 %vm1312_vm0, %v1311_v0  ;;  %1096 = vmatprep.mubr.msk.f32.mxu1 %vm1312_vm0, %v1311_v0 }
 0x190   : > { %v410_v47 = vpop.f32.mrf.mxu0  ;;  %v483_v48 = vpop.f32.mrf.mxu1 }
 0x191   : > { %v411_v49 = vadd.f32 %v1045_v45, %v410_v47  ;;  %v484_v50 = vadd.f32 %v1046_v46, %v483_v48 }
 0x192   : > { %v1081_v51 = vpop.f32.mrf.mxu0  ;;  %v1088_v52 = vpop.f32.mrf.mxu1 }
 0x193   : > { %565 = vrot.lane.b32.xlu1 %v484_v50, %s1313_s18  ;;  %488 = vrot.lane.b32.xlu0 %v411_v49, %s1313_s18 }
 0x205   : > { %v566_v53 = vpop.permute.xlu1 %565  ;;  %v489_v54 = vpop.permute.xlu0 %488 }
 0x206   : > { %1090 = vmatpush3.xpose.msk.msra.mxu0 %vm340_vm1, %v489_v54  ;;  %1095 = vmatpush3.xpose.msk.msra.mxu1 %vm340_vm1, %v566_v53 }
 0x207   : > { %1099 = vmatprep.subr.mxu0 %v1311_v0  ;;  %1104 = vmatprep.subr.mxu1 %v1311_v0 }
 0x209   : > { %1092 = vmatmul.mubr.msk.f32.vlgmr.msra.gmra.mxu0 %vm340_vm1, %v411_v49  ;;  %1097 = vmatmul.mubr.msk.f32.vlgmr.msra.gmra.mxu1 %vm340_vm1, %v484_v50 }
 0x20a   : > { %1101 = vmatprep.mubr.msk.f32.mxu0 %vm1312_vm0, %v1311_v0  ;;  %1106 = vmatprep.mubr.msk.f32.mxu1 %vm1312_vm0, %v1311_v0 }
 0x2c9   : > { %v560_v55 = vpop.f32.mrf.mxu0  ;;  %v637_v56 = vpop.f32.mrf.mxu1 }
 0x2ca   : > { %v645_v57 = vsel %vm641_vm2, %v637_v56, -inf  ;;  %v642_v58 = vsel %vm641_vm2, %v560_v55, -inf }
 0x2cb   : > { %v1098_v59 = vpop.f32.mrf.mxu1  ;;  %646 = vmax.xlane.f32.xlu0 %v645_v57  ;;  %643 = vmax.xlane.f32.xlu1 %v642_v58  ;;  %v1093_v60 = vpop.f32.mrf.mxu0 }
 0x354   : > { %v647_v61 = vpop.xlane.xlu0 %646  ;;  %v644_v62 = vpop.xlane.xlu1 %643 }
 0x355   : > { %v649_v63 = vsub.f32 %v637_v56, %v647_v61  ;;  %v648_v1 = vsub.f32 %v560_v55, %v644_v62 }
 0x357   : > { %v652_v2 = vmul.f32 1.442695, %v649_v63  ;;  %v650_v3 = vmul.f32 1.442695, %v648_v1 }
 0x359   : > { %1175 = vpow2.f32 %v652_v2 }
 0x35a   : > { %1177 = vpow2.f32 %v650_v3 }
 0x366   : > { %v1176_v4 = vpop.eup %1175 }
 0x367   : > { %v1178_v5 = vpop.eup %1177  ;;  %v657_v6 = vsel %vm641_vm2, %v1176_v4, 0.0 }
 0x368   : > { %658 = vadd.xlane.f32.xlu1 %v657_v6  ;;  %v654_v7 = vsel %vm641_vm2, %v1178_v5, 0.0 }
 0x369   : > { %655 = vadd.xlane.f32.xlu0 %v654_v7 }
 0x379   : > { %740 = vrot.lane.b32.xlu1 %v484_v50, %s1316_s25 }
 0x37f   : > { %664 = vrot.lane.b32.xlu0 %v411_v49, %s1316_s25 }
 0x3f1   : > { %v659_v8 = vpop.xlane.xlu1 %658 }
 0x3f2   : > { %v656_v9 = vpop.xlane.xlu0 %655  ;;  %1179 = vrcp.f32 %v659_v8 }
 0x3f3   : > { %1181 = vrcp.f32 %v656_v9 }
 0x3f5   : > { %v741_v10 = vpop.permute.xlu1 %740 }
 0x3f6   : > { %v665_v11 = vpop.permute.xlu0 %664  ;;  %1105 = vmatpush3.msra.mxu1 %v741_v10 }
 0x3f7   : > { %1100 = vmatpush3.msra.mxu0 %v665_v11 }
 0x3ff   : > { %v1180_v12 = vpop.eup %1179 }
 0x400   : > { %v1182_v14 = vpop.eup %1181  ;;  %v663_v15 = vmul.f32 %v1180_v12, %v1176_v4 }
 0x401   : > { %v661_v16 = vmul.f32 %v1182_v14, %v1178_v5 }
 0x402   : > { %1107 = vmatmul.mubr.msk.f32.vlgmr.msra.gmra.mxu1 %vm641_vm2, %v663_v15 }
 0x403   : > { %1102 = vmatmul.mubr.msk.f32.vlgmr.msra.gmra.mxu0 %vm641_vm2, %v661_v16 }
 0x4c2   : > { %v812_v17 = vpop.f32.mrf.mxu1 }
 0x4c3   : > { %v736_v18 = vpop.f32.mrf.mxu0  ;;  %v831_v20 = vcombine.high %v812_v17, %v1311_v0  ;;  %v838_v21 = vrot.slane %v812_v17, %v1471_v13 }
 0x4c4   : > { %v816_v22 = vcombine.high %v736_v18, %v1311_v0  ;;  %v823_v23 = vrot.slane %v736_v18, %v1471_v13  ;;  %v1108_v24 = vpop.f32.mrf.mxu1 }
 0x4c5   : > { %v845_v25 = vrot.slane %v831_v20, %v1471_v13  ;;  %v1103_v26 = vpop.f32.mrf.mxu0 }
 0x4c6   : > { %v830_v27 = vrot.slane %v816_v22, %v1471_v13  ;;  %v846_v28 = vcombine.low %v823_v23, %v838_v21  ;;  %v847_v29 = vcombine.high %v823_v23, %v838_v21 }
 0x4c8   : > { %v854_v30 = vrot.slane %v846_v28, %v1476_v19  ;;  %v861_v31 = vrot.slane %v847_v29, %v1476_v19  ;;  %v862_v32 = vcombine.low %v830_v27, %v845_v25  ;;  %v863_v33 = vcombine.high %v830_v27, %v845_v25 }
 0x4ca   : > { %v870_v34 = vrot.slane %v862_v32, %v1476_v19  ;;  %v877_v0 = vrot.slane %v863_v33, %v1476_v19  ;;  %v882_v35 = vcombine.low %v854_v30, %v861_v31  ;;  %v1055_v36 = vcombine.high %v854_v30, %v861_v31 }
 0x4cc   : > { %v889_v37 = vrot.slane %v882_v35, %v1471_v13  ;;  %v897_v38 = vrot.slane %v1055_v36, %v1471_v13  ;;  %v898_v39 = vcombine.low %v870_v34, %v877_v0  ;;  %v1056_v40 = vcombine.high %v870_v34, %v877_v0 }
 0x4ce   : > { %v905_v41 = vrot.slane %v898_v39, %v1471_v13  ;;  %v913_v42 = vrot.slane %v1056_v40, %v1471_v13  ;;  %v914_v43 = vcombine.low %v889_v37, %v897_v38 }
 0x4d0   : > { %v922_v44 = vcombine.low %v905_v41, %v913_v42  ;;  %v921_v45 = vrot.slane %v914_v43, %v1476_v19 }
 0x4d2   : > { %v929_v46 = vrot.slane %v922_v44, %v1476_v19 }
 0x4d4   : > { %v931_v47 = vcombine.high %v921_v45, %v929_v46  ;;  %v930_v48 = vcombine.low %v921_v45, %v929_v46 }
 0x4d6   : > { %933 = vrot.lane.b32.xlu1 %v931_v47, %s1317_s28 }
 0x548   : > { %v934_v49 = vpop.permute.xlu1 %933 }
 0x549   : > { %v936_v13 = vsel %vm340_vm1, %v930_v48, %v934_v49 }
 0x54a   : > { %938 = vst.msk [vmem:[%s200_s30] sm:$0xff] %vm937_vm3, %v936_v13 }
 0x54b   : > { %1250 = shalt.err (!%p1247_p0)
}
 0x54c   : > { %s1251_s18 = scalar_lea.hbm %s1543_s9, 128  ;;  %s1255_s17 = scalar_lea.hbm %s1584_s3, 256 }
 0x54d   : > { %p1252_p5 = scmp.ne.s32.totalorder %s1543_s9, %s1251_s18  ;;  %p1256_p1 = scmp.lt.s32.totalorder %s1543_s9, %s1584_s3 }
 0x54e   : > { %p1257_p4 = scmp.lt.s32.totalorder %s1255_s17, %s1251_s18 }
 0x54f   : > { %p1253_p9 = pnand %p1252_p5, %p1600_p3 }
 0x550   : > { %p1258_p6 = por %p1257_p4, %p1256_p1 }
 0x551   : > { %p1254_p12 = pneg %p1253_p9 }
 0x553   : > { %p1259_p8 = pnand %p1258_p6, %p1254_p12 }
 0x555   : > { %1262 = shalt.err (!%p1259_p8)
}
 0x556   : > { %1115 = dma.vmem_to_hbm [thread:$0]  (%p1600_p3), %s954_s4, 128, %s1543_s9, %s940_s10  }
 0x557 PF: > { %s965_s25 = sand.u32 1, %s1293_s12   ;;  %p1601_p11 = scmp.ne.s32.totalorder %s1590_s19, 0 }
 0x558   : > { %p1602_p7 = scmp.ge.s32.totalorder %s1305_s15, 2  ;;  %s966_s28 = scalar_lea.sflag [#allocation4], %s965_s25 }
 0x55a   : > { %p1126_p10 = pnand %p1602_p7, %p1601_p11 }
 0x55c   : > { %p1127_p2 = pneg %p1126_p10 }
 0x55e   : > { %1288 = dma.done.wait (%p1127_p2), %s966_s28, 128  }
 0x55f   : > { %1290 = vsyncadd (%p1127_p2), %s966_s28, 4294967168  ;;  %p17_p13 = scmp.ge.s32.totalorder %s1393_s24, 4   ;;  %s1603_s12 = smov %s1297_s13 }
 0x560   : > { %s1604_s13 = smov %s1301_s14  ;;  %s1605_s14 = smov %s1410_s5 }
 0x561   : > { %s1606_s15 = smov %s1393_s24  ;;  %19 = sbr.rel (!%p17_p13) target bundleno = 6 (0x6), region = 81 }
 0x566   :  { %971 = vsyncpa [#allocation3], 1 }
 0x567   :  { %973 = vsyncpa [#allocation3 + $0x1], 1 }
 0x568   :  { %974 = vsyncpa [#allocation6], 1 }
 0x569   :  { %975 = vsyncpa [#allocation4], 1 }
 0x56a   :  { %977 = vsyncpa [#allocation4 + $0x1], 1 }

</bundles_post_ra>
